<compile_context>
chip_gen: v6e
topology: v6e:2x2x1
jax: 0.10.0
libtpu: 0.0.40
codegen_flags: <defaults>
</compile_context>

<pallas_src>
from functools import partial
from typing import NamedTuple, Optional

import jax
import jax.numpy as jnp
from jax.experimental import pallas as pl
from jax.experimental.pallas import tpu as pltpu


class SparseTensor(NamedTuple):
    coords: jax.Array  # [N, 4] int32 (metadata, passes through untouched)
    feats: jax.Array   # [N, C] float

    def replace(self, new_feats):
        return SparseTensor(coords=self.coords, feats=new_feats)


# -----------------------------------------------------------------------------
# Activation math (shared by the kernel body and the tiny-tensor fast path).
# -----------------------------------------------------------------------------
def _apply_activation(x, activation: str):
    if activation == "relu":
        # Exact in any dtype; no f32 upcast needed (keeps vreg footprint low).
        return jnp.maximum(x, 0)
    xf = x.astype(jnp.float32)
    if activation == "gelu":
        # Exact GELU (matches torch.nn.GELU() default, approximate='none').
        y = 0.5 * xf * (1.0 + jax.scipy.special.erf(xf * (1.0 / jnp.sqrt(2.0))))
    elif activation == "silu":
        y = xf * jax.nn.sigmoid(xf)
    else:
        raise ValueError(f"unsupported activation: {activation}")
    return y.astype(x.dtype)


def _activation_kernel(x_ref, o_ref, *, activation: str):
    o_ref[...] = _apply_activation(x_ref[...], activation)


# -----------------------------------------------------------------------------
# Wrapper
# -----------------------------------------------------------------------------
_SMALL_N_ELEMENTS = 4096               # below this, plain jnp beats launch overhead
_TARGET_BLOCK_BYTES = 2 * 1024 * 1024  # ~2 MiB blocks; 4x (double-buffered in+out)
                                       # = 8 MiB, safe for v5e/v6e/v7x VMEM limits.


def _run_elementwise(x2d: jax.Array, activation: str,
                     block_rows: Optional[int] = None) -> jax.Array:
    """Run the elementwise activation kernel over a 2-D slab (rows, cols)."""
    rows, cols = x2d.shape
    itemsize = jnp.dtype(x2d.dtype).itemsize
    if block_rows is None:
        block_rows = max(8, (_TARGET_BLOCK_BYTES // (cols * itemsize)) // 8 * 8)
    if rows <= block_rows:
        block_rows = rows  # single full-extent block (no (8,128) constraint)

    grid = (pl.cdiv(rows, block_rows),)  # ragged last block handled by Pallas

    return pl.pallas_call(
        partial(_activation_kernel, activation=activation),
        out_shape=jax.ShapeDtypeStruct((rows, cols), x2d.dtype),
        grid_spec=pltpu.PrefetchScalarGridSpec(
            num_scalar_prefetch=0,
            grid=grid,
            in_specs=[pl.BlockSpec((block_rows, cols), lambda i: (i, 0))],
            out_specs=pl.BlockSpec((block_rows, cols), lambda i: (i, 0)),
        ),
        compiler_params=pltpu.CompilerParams(
            dimension_semantics=("parallel",)),
    )(x2d)


def sparse_activation(x: SparseTensor, activation: str = "gelu",
                      block_rows: Optional[int] = None) -> SparseTensor:
    """Apply an elementwise activation to the features of a SparseTensor."""
    feats = x.feats
    n, c = feats.shape
    total = n * c

    # Tiny-tensor fast path: launching a kernel costs more than the math.
    if total < _SMALL_N_ELEMENTS:
        return x.replace(_apply_activation(feats, activation))

    # Lane-dense path: view the contiguous feats buffer as (rows, L) with L a
    # wide multiple of 128 (free row-major reshape), run the kernel, view back.
    for lane_width in (1024, 512, 256, 128):
        if total % lane_width == 0:
            flat = feats.reshape(total // lane_width, lane_width)
            out = _run_elementwise(flat, activation, block_rows=block_rows)
            return x.replace(out.reshape(n, c))

    # Fallback: no wide lane width divides N*C; tile the original (N, C).
    out = _run_elementwise(feats, activation, block_rows=block_rows)
    return x.replace(out)


# -----------------------------------------------------------------------------
# Pure-JAX reference
# -----------------------------------------------------------------------------
def _reference(x: SparseTensor, activation: str = "gelu") -> SparseTensor:
    xf = x.feats.astype(jnp.float32)
    if activation == "gelu":
        y = 0.5 * xf * (1.0 + jax.scipy.special.erf(xf / jnp.sqrt(2.0)))
    elif activation == "relu":
        y = jnp.maximum(xf, 0.0)
    elif activation == "silu":
        y = xf * jax.nn.sigmoid(xf)
    else:
        raise ValueError(activation)
    return x.replace(y.astype(x.feats.dtype))


if __name__ == "__main__":
    key = jax.random.PRNGKey(0)
    k1, k2, k3, k4 = jax.random.split(key, 4)

    # Case 1: lane-dense kernel path (2048*32 = 65536 elems -> (64, 1024) slab).
    nnz, channels = 2048, 32
    feats = jax.random.normal(k1, (nnz, channels), dtype=jnp.float32)
    coords = jax.random.randint(k2, (nnz, 4), 0, 16, dtype=jnp.int32)
    sp = SparseTensor(coords=coords, feats=feats)

    for act in ("gelu", "relu", "silu"):
        out = sparse_activation(sp, activation=act)
        jax.block_until_ready(out.feats)
        ref = _reference(sp, activation=act)
        assert out.coords.shape == sp.coords.shape
        assert out.feats.shape == sp.feats.shape
        assert jnp.allclose(out.feats, ref.feats, atol=1e-5, rtol=1e-5), act

    # Case 2: force a multi-block grid with a ragged last block
    # (64 rows, 40-row blocks -> grid=2, last block masked on writeback).
    out2 = sparse_activation(sp, activation="gelu", block_rows=40)
    jax.block_until_ready(out2.feats)
    ref2 = _reference(sp, activation="gelu")
    assert jnp.allclose(out2.feats, ref2.feats, atol=1e-5, rtol=1e-5)

    # Case 3: element count not divisible by 128 -> (N, C) fallback tiling.
    feats3 = jax.random.normal(k3, (200, 30), dtype=jnp.float32)
    coords3 = jax.random.randint(k4, (200, 4), 0, 16, dtype=jnp.int32)
    sp3 = SparseTensor(coords=coords3, feats=feats3)
    out3 = sparse_activation(sp3, activation="gelu")
    jax.block_until_ready(out3.feats)
    ref3 = _reference(sp3, activation="gelu")
    assert jnp.allclose(out3.feats, ref3.feats, atol=1e-5, rtol=1e-5)

    # Case 4: tiny tensor takes the plain-jnp fast path.
    sp4 = SparseTensor(coords=coords3[:16], feats=feats3[:16, :8])
    out4 = sparse_activation(sp4, activation="silu")
    jax.block_until_ready(out4.feats)
    ref4 = _reference(sp4, activation="silu")
    assert jnp.allclose(out4.feats, ref4.feats, atol=1e-5, rtol=1e-5)

    print("KERNEL_OK")
</pallas_src>

<mosaic_0001>
module attributes {stable_mosaic.version = 11 : i64} {
  func.func @_activation_kernel(%arg0: i32, %arg1: memref<64x1024xf32, #tpu.memory_space<vmem>>, %arg2: memref<64x1024xf32, #tpu.memory_space<vmem>>) attributes {dimension_semantics = [#tpu.dimension_semantics<parallel>], iteration_bounds = array<i64: 1>, scalar_prefetch = 0 : i64, scratch_operands = 0 : i64, tpu.core_type = #tpu.core_type<tc>, window_params = [{transform_indices = @transform_0, window_bounds = array<i64: 64, 1024>}, {transform_indices = @transform_1, window_bounds = array<i64: 64, 1024>}]} {
    %c0 = arith.constant 0 : index
    %c0_0 = arith.constant 0 : index
    %0 = vector.load %arg1[%c0, %c0_0] : memref<64x1024xf32, #tpu.memory_space<vmem>>, vector<64x1024xf32>
    %cst = arith.constant 5.000000e-01 : f32
    %1 = vector.broadcast %cst : f32 to vector<64x1024xf32>
    %2 = arith.mulf %1, %0 : vector<64x1024xf32>
    %cst_1 = arith.constant 2.000000e+00 : f32
    %3 = math.sqrt %cst_1 : f32
    %cst_2 = arith.constant 1.000000e+00 : f32
    %4 = arith.divf %cst_2, %3 : f32
    %5 = vector.broadcast %4 : f32 to vector<64x1024xf32>
    %6 = arith.mulf %0, %5 : vector<64x1024xf32>
    %7 = math.erf %6 : vector<64x1024xf32>
    %cst_3 = arith.constant 1.000000e+00 : f32
    %8 = vector.broadcast %cst_3 : f32 to vector<64x1024xf32>
    %9 = arith.addf %8, %7 : vector<64x1024xf32>
    %10 = arith.mulf %2, %9 : vector<64x1024xf32>
    %c0_4 = arith.constant 0 : index
    %c0_5 = arith.constant 0 : index
    %11 = vector.load %arg2[%c0_4, %c0_5] : memref<64x1024xf32, #tpu.memory_space<vmem>>, vector<64x1024xf32>
    tpu.vector_store %arg2[%c0_4, %c0_5], %10 {strides = array<i32>} : memref<64x1024xf32, #tpu.memory_space<vmem>>, vector<64x1024xf32>,
    return
  }
  func.func @transform_0(%arg0: i32) -> (i32, i32) {
    %c0_i32 = arith.constant 0 : i32
    %c0_i32_0 = arith.constant 0 : i32
    return %arg0, %c0_i32 : i32, i32
  }
  func.func @transform_1(%arg0: i32) -> (i32, i32) {
    %c0_i32 = arith.constant 0 : i32
    %c0_i32_0 = arith.constant 0 : i32
    return %arg0, %c0_i32 : i32, i32
  }
}

</mosaic_0001>

<bundles_post_ra>
// kernel: tpu_custom_call.1
= control target key start
LH: loop header
LB: loop body
LE: loop exit
PB: predicated region body
PF: predicated region fallthrough
CT: control target
= control target key end

     0   :  { %6 = vsyncpa [#allocation3], 0  ;;  %s929_s0 = inlined_call_operand.hbm [shape: f32[64,1024], index: 0, kind: input, shape index: {}]   ;;  %s930_s1 = inlined_call_operand.hbm [shape: f32[64,1024], index: 1, kind: output, shape index: {}]  }
   0x1   :  { %7 = vsyncpa [#allocation4], 0  ;;  %s664_s6 = smov [#allocation2]  }
   0x2   :  { %s13_s7 = sshll.u32 %s664_s6, 4  ;;  %s14_s7 = int_to_ptr.vmem [resolvable:$true] %s13_s7 }
   0x3   :  { %s628_s8 = scalar_lea.vmem %s14_s7, 8192  ;;  %p633_p1 = scmp.lt.s32.totalorder %s14_s7, %s14_s7 }
   0x4   :  { %p629_p0 = scmp.ne.s32.totalorder %s14_s7, %s628_s8  ;;  %p634_p2 = scmp.lt.s32.totalorder %s628_s8, %s628_s8 }
   0x6   :  { %p635_p3 = por %p634_p2, %p633_p1 }
   0x8   :  { %p636_p4 = pnand %p635_p3, %p629_p0 }
   0xa   :  { %639 = shalt.err (!%p636_p4)
}
   0xb   :  { %s665_s9 = smov 1024   ;;  %s666_s10 = smov 64  }
   0xc   :  { %19 = dma.hbm_to_vmem [thread:$0]  %s929_s0, 8192, %s14_s7, [#allocation3], %s665_s9, %s665_s9, %s666_s10  }
   0xd   :  { %660 = dma.done.wait [#allocation3], 8192  }
   0xe   :  { %661 = vsyncadd [#allocation3], 4294959104  ;;  %v23_v0 = vld [vmem:[#allocation2] sm:$0xff]  ;;  %v24_v1 = vld [vmem:[#allocation2 + $0x8] sm:$0xff]  ;;  %s667_s0 = smov [#allocation5]  }
   0xf   :  { %v25_v2 = vld [vmem:[#allocation2 + $0x10] sm:$0xff]  ;;  %v151_v3 = vmul.f32 0.70710677, %v23_v0  ;;  %v152_v4 = vmul.f32 0.70710677, %v24_v1  ;;  %v26_v6 = vld [vmem:[#allocation2 + $0x18] sm:$0xff] }
  0x10   :  { %v153_v5 = vmul.f32 0.70710677, %v25_v2  ;;  %v27_v7 = vld [vmem:[#allocation2 + $0x20] sm:$0xff]  ;;  %v28_v8 = vld [vmem:[#allocation2 + $0x28] sm:$0xff]  ;;  %v154_v9 = vmul.f32 0.70710677, %v26_v6 }
  0x11   :  { %492 = verf.f32 %v151_v3  ;;  %v29_v10 = vld [vmem:[#allocation2 + $0x30] sm:$0xff]  ;;  %v30_v11 = vld [vmem:[#allocation2 + $0x38] sm:$0xff]  ;;  %v155_v12 = vmul.f32 0.70710677, %v27_v7  ;;  %v156_v13 = vmul.f32 0.70710677, %v28_v8 }
  0x12   :  { %494 = verf.f32 %v152_v4  ;;  %v31_v14 = vld [vmem:[#allocation2 + $0x40] sm:$0xff]  ;;  %v157_v15 = vmul.f32 0.70710677, %v29_v10  ;;  %v32_v16 = vld [vmem:[#allocation2 + $0x48] sm:$0xff]  ;;  %v684_v17 = vmul.f32 0.5, %v23_v0  ;;  %v33_v19 = vld [vmem:[#allocation2 + $0x50] sm:$0xff] }
  0x13   :  { %496 = verf.f32 %v153_v5  ;;  %v158_v18 = vmul.f32 0.70710677, %v30_v11  ;;  %v686_v20 = vmul.f32 0.5, %v24_v1  ;;  %v688_v21 = vmul.f32 0.5, %v25_v2  ;;  %v34_v23 = vld [vmem:[#allocation2 + $0x58] sm:$0xff]  ;;  %v35_v27 = vld [vmem:[#allocation2 + $0x60] sm:$0xff] }
  0x14   :  { %498 = verf.f32 %v154_v9  ;;  %v159_v22 = vmul.f32 0.70710677, %v31_v14  ;;  %v690_v24 = vmul.f32 0.5, %v26_v6  ;;  %v692_v25 = vmul.f32 0.5, %v27_v7  ;;  %v36_v31 = vld [vmem:[#allocation2 + $0x68] sm:$0xff]  ;;  %v37_v35 = vld [vmem:[#allocation2 + $0x70] sm:$0xff] }
  0x15   :  { %500 = verf.f32 %v155_v12  ;;  %v160_v26 = vmul.f32 0.70710677, %v32_v16  ;;  %v694_v28 = vmul.f32 0.5, %v28_v8  ;;  %v696_v29 = vmul.f32 0.5, %v29_v10  ;;  %v38_v39 = vld [vmem:[#allocation2 + $0x78] sm:$0xff]  ;;  %v39_v43 = vld [vmem:[#allocation2 + $0x80] sm:$0xff] }
  0x16   :  { %502 = verf.f32 %v156_v13  ;;  %v161_v30 = vmul.f32 0.70710677, %v33_v19  ;;  %v698_v32 = vmul.f32 0.5, %v30_v11  ;;  %v700_v33 = vmul.f32 0.5, %v31_v14  ;;  %v40_v44 = vld [vmem:[#allocation2 + $0x88] sm:$0xff]  ;;  %v41_v48 = vld [vmem:[#allocation2 + $0x90] sm:$0xff] }
  0x17   :  { %504 = verf.f32 %v157_v15  ;;  %v162_v34 = vmul.f32 0.70710677, %v34_v23  ;;  %v702_v36 = vmul.f32 0.5, %v32_v16  ;;  %v704_v37 = vmul.f32 0.5, %v33_v19  ;;  %v42_v52 = vld [vmem:[#allocation2 + $0x98] sm:$0xff]  ;;  %v43_v56 = vld [vmem:[#allocation2 + $0xa0] sm:$0xff] }
  0x18   :  { %506 = verf.f32 %v158_v18  ;;  %v163_v38 = vmul.f32 0.70710677, %v35_v27  ;;  %v706_v40 = vmul.f32 0.5, %v34_v23  ;;  %v708_v41 = vmul.f32 0.5, %v35_v27  ;;  %v44_v61 = vld [vmem:[#allocation2 + $0xa8] sm:$0xff]  ;;  %v45_v6 = vld [vmem:[#allocation2 + $0xb0] sm:$0xff] }
  0x19   :  { %508 = verf.f32 %v159_v22  ;;  %v164_v42 = vmul.f32 0.70710677, %v36_v31  ;;  %v710_v45 = vmul.f32 0.5, %v36_v31  ;;  %v712_v46 = vmul.f32 0.5, %v37_v35  ;;  %v729_v11 = vld [vmem:[#allocation2 + $0xb8] sm:$0xff]  ;;  %v734_v16 = vld [vmem:[#allocation2 + $0xc0] sm:$0xff] }
  0x1a   :  { %510 = verf.f32 %v160_v26  ;;  %v165_v47 = vmul.f32 0.70710677, %v37_v35  ;;  %v714_v49 = vmul.f32 0.5, %v38_v39  ;;  %v166_v50 = vmul.f32 0.70710677, %v38_v39  ;;  %v737_v23 = vld [vmem:[#allocation2 + $0xc8] sm:$0xff] }
  0x1b   :  { %512 = verf.f32 %v161_v30  ;;  %v716_v51 = vmul.f32 0.5, %v39_v43  ;;  %v167_v53 = vmul.f32 0.70710677, %v39_v43  ;;  %v718_v54 = vmul.f32 0.5, %v40_v44  ;;  %v741_v31 = vld [vmem:[#allocation2 + $0xd0] sm:$0xff]  ;;  %v745_v39 = vld [vmem:[#allocation2 + $0xd8] sm:$0xff] }
  0x1c   :  { %514 = verf.f32 %v162_v34  ;;  %v168_v55 = vmul.f32 0.70710677, %v40_v44  ;;  %v720_v58 = vmul.f32 0.5, %v41_v48  ;;  %v169_v59 = vmul.f32 0.70710677, %v41_v48  ;;  %s476_s13 = sshll.u32 %s667_s0, 4  ;;  %s477_s13 = int_to_ptr.vmem [resolvable:$true] %s476_s13 }
  0x1d   :  { %516 = verf.f32 %v163_v38  ;;  %v722_v60 = vmul.f32 0.5, %v42_v52  ;;  %v170_v0 = vmul.f32 0.70710677, %v42_v52  ;;  %v724_v1 = vmul.f32 0.5, %v43_v56  ;;  %s640_s14 = scalar_lea.vmem %s477_s13, 8192  ;;  %p645_p6 = scmp.lt.s32.totalorder %s477_s13, %s477_s13 }
  0x1e   :  { %v493_v57 = vpop.eup %492  ;;  %518 = verf.f32 %v164_v42  ;;  %v171_v4 = vmul.f32 0.70710677, %v43_v56  ;;  %v726_v5 = vmul.f32 0.5, %v44_v61  ;;  %v172_v10 = vmul.f32 0.70710677, %v44_v61  ;;  %p641_p5 = scmp.ne.s32.totalorder %s477_s13, %s640_s14  ;;  %p646_p7 = scmp.lt.s32.totalorder %s640_s14, %s640_s14 }
  0x1f   :  { %v495_v62 = vpop.eup %494  ;;  %v279_v63 = vadd.f32 1.0, %v493_v57  ;;  %520 = verf.f32 %v165_v47  ;;  %v732_v15 = vmul.f32 0.5, %v45_v6  ;;  %v174_v30 = vmul.f32 0.70710677, %v729_v11  ;;  %v749_v47 = vld [vmem:[#allocation2 + $0xe0] sm:$0xff] }
  0x20   :  { %v497_v2 = vpop.eup %496  ;;  %v280_v3 = vadd.f32 1.0, %v495_v62  ;;  %522 = verf.f32 %v166_v50  ;;  %v175_v38 = vmul.f32 0.70710677, %v734_v16  ;;  %v176_v44 = vmul.f32 0.70710677, %v737_v23  ;;  %p647_p8 = por %p646_p7, %p645_p6 }
  0x21   :  { %v499_v7 = vpop.eup %498  ;;  %v343_v8 = vmul.f32 %v279_v63, %v684_v17  ;;  %v281_v9 = vadd.f32 1.0, %v497_v2  ;;  %524 = verf.f32 %v167_v53  ;;  %v173_v17 = vmul.f32 0.70710677, %v45_v6  ;;  %v753_v53 = vld [vmem:[#allocation2 + $0xe8] sm:$0xff] }
  0x22   :  { %v501_v12 = vpop.eup %500  ;;  %v344_v13 = vmul.f32 %v280_v3, %v686_v20  ;;  %v282_v14 = vadd.f32 1.0, %v499_v7  ;;  %526 = verf.f32 %v168_v55  ;;  %v177_v52 = vmul.f32 0.70710677, %v741_v31  ;;  %p648_p9 = pnand %p647_p8, %p641_p5 }
  0x23   :  { %v503_v18 = vpop.eup %502  ;;  %407 = vst [vmem:[#allocation5] sm:$0xff] %v343_v8  ;;  %v345_v19 = vmul.f32 %v281_v9, %v688_v21  ;;  %v283_v22 = vadd.f32 1.0, %v501_v12  ;;  %528 = verf.f32 %v169_v59  ;;  %v178_v57 = vmul.f32 0.70710677, %v745_v39  ;;  %v757_v59 = vld [vmem:[#allocation2 + $0xf0] sm:$0xff]  ;;  %v767_v9 = vld [vmem:[#allocation2 + $0x100] sm:$0xff] }
  0x24   :  { %v505_v26 = vpop.eup %504  ;;  %408 = vst [vmem:[#allocation5 + $0x8] sm:$0xff] %v344_v13  ;;  %v346_v27 = vmul.f32 %v282_v14, %v690_v24  ;;  %v284_v20 = vadd.f32 1.0, %v503_v18  ;;  %530 = verf.f32 %v170_v0  ;;  %v179_v63 = vmul.f32 0.70710677, %v749_v47  ;;  %v761_v0 = vld [vmem:[#allocation2 + $0xf8] sm:$0xff] }
  0x25   :  { %v507_v34 = vpop.eup %506  ;;  %409 = vst [vmem:[#allocation5 + $0x10] sm:$0xff] %v345_v19  ;;  %v347_v35 = vmul.f32 %v283_v22, %v692_v25  ;;  %v285_v21 = vadd.f32 1.0, %v505_v26  ;;  %532 = verf.f32 %v171_v4  ;;  %v180_v4 = vmul.f32 0.70710677, %v753_v53  ;;  %v775_v22 = vld [vmem:[#allocation2 + $0x108] sm:$0xff] }
  0x26   :  { %v509_v42 = vpop.eup %508  ;;  %410 = vst [vmem:[#allocation5 + $0x18] sm:$0xff] %v346_v27  ;;  %v348_v24 = vmul.f32 %v284_v20, %v694_v28  ;;  %v286_v43 = vadd.f32 1.0, %v507_v34  ;;  %534 = verf.f32 %v172_v10  ;;  %v183_v27 = vmul.f32 0.70710677, %v767_v9 }
  0x27   :  { %v511_v48 = vpop.eup %510  ;;  %411 = vst [vmem:[#allocation5 + $0x20] sm:$0xff] %v347_v35  ;;  %v349_v25 = vmul.f32 %v285_v21, %v696_v29  ;;  %v287_v50 = vadd.f32 1.0, %v509_v42  ;;  %536 = verf.f32 %v173_v17  ;;  %v781_v34 = vmul.f32 0.5, %v734_v16  ;;  %v787_v42 = vld [vmem:[#allocation2 + $0x118] sm:$0xff] }
  0x28   :  { %v513_v55 = vpop.eup %512  ;;  %412 = vst [vmem:[#allocation5 + $0x28] sm:$0xff] %v348_v24  ;;  %v350_v28 = vmul.f32 %v286_v43, %v698_v32  ;;  %v288_v56 = vadd.f32 1.0, %v511_v48  ;;  %538 = verf.f32 %v174_v30  ;;  %v112_v16 = vmul.f32 0.5, %v737_v23 }
  0x29   :  { %v515_v61 = vpop.eup %514  ;;  %413 = vst [vmem:[#allocation5 + $0x30] sm:$0xff] %v349_v25  ;;  %v351_v29 = vmul.f32 %v287_v50, %v700_v33  ;;  %v289_v62 = vadd.f32 1.0, %v513_v55  ;;  %540 = verf.f32 %v175_v38  ;;  %v181_v33 = vmul.f32 0.70710677, %v757_v59  ;;  %v793_v50 = vld [vmem:[#allocation2 + $0x120] sm:$0xff] }
  0x2a   :  { %v517_v2 = vpop.eup %516  ;;  %414 = vst [vmem:[#allocation5 + $0x38] sm:$0xff] %v350_v28  ;;  %v352_v32 = vmul.f32 %v288_v56, %v702_v36  ;;  %v290_v3 = vadd.f32 1.0, %v515_v61  ;;  %542 = verf.f32 %v176_v44  ;;  %v182_v36 = vmul.f32 0.70710677, %v761_v0  ;;  %v798_v56 = vld [vmem:[#allocation2 + $0x128] sm:$0xff] }
  0x2b   :  { %v519_v6 = vpop.eup %518  ;;  %415 = vst [vmem:[#allocation5 + $0x40] sm:$0xff] %v351_v29  ;;  %v353_v7 = vmul.f32 %v289_v62, %v704_v37  ;;  %v291_v8 = vadd.f32 1.0, %v517_v2  ;;  %544 = verf.f32 %v177_v52  ;;  %v773_v37 = vmul.f32 0.5, %v729_v11  ;;  %v783_v11 = vld [vmem:[#allocation2 + $0x110] sm:$0xff] }
  0x2c   :  { %v521_v10 = vpop.eup %520  ;;  %416 = vst [vmem:[#allocation5 + $0x48] sm:$0xff] %v352_v32  ;;  %v354_v12 = vmul.f32 %v290_v3, %v706_v40  ;;  %v292_v13 = vadd.f32 1.0, %v519_v6  ;;  %546 = verf.f32 %v178_v57  ;;  %v184_v38 = vmul.f32 0.70710677, %v775_v22  ;;  %v804_v2 = vld [vmem:[#allocation2 + $0x130] sm:$0xff]  ;;  %v809_v6 = vld [vmem:[#allocation2 + $0x138] sm:$0xff] }
  0x2d   :  { %v523_v14 = vpop.eup %522  ;;  %417 = vst [vmem:[#allocation5 + $0x50] sm:$0xff] %v353_v7  ;;  %v355_v18 = vmul.f32 %v291_v8, %v708_v41  ;;  %v293_v19 = vadd.f32 1.0, %v521_v10  ;;  %548 = verf.f32 %v179_v63  ;;  %v186_v23 = vmul.f32 0.70710677, %v787_v42 }
  0x2e   :  { %v525_v17 = vpop.eup %524  ;;  %418 = vst [vmem:[#allocation5 + $0x58] sm:$0xff] %v354_v12  ;;  %v356_v26 = vmul.f32 %v292_v13, %v710_v45  ;;  %v294_v40 = vadd.f32 1.0, %v523_v14  ;;  %550 = verf.f32 %v180_v4  ;;  %v114_v29 = vmul.f32 0.5, %v745_v39  ;;  %v815_v13 = vld [vmem:[#allocation2 + $0x140] sm:$0xff] }
  0x2f   :  { %v527_v20 = vpop.eup %526  ;;  %419 = vst [vmem:[#allocation5 + $0x60] sm:$0xff] %v355_v18  ;;  %v357_v30 = vmul.f32 %v293_v19, %v712_v46  ;;  %v295_v41 = vadd.f32 1.0, %v525_v17  ;;  %552 = verf.f32 %v181_v33  ;;  %v188_v39 = vmul.f32 0.70710677, %v798_v56  ;;  %v820_v19 = vld [vmem:[#allocation2 + $0x148] sm:$0xff] }
  0x30   :  { %v529_v35 = vpop.eup %528  ;;  %420 = vst [vmem:[#allocation5 + $0x68] sm:$0xff] %v356_v26  ;;  %v358_v21 = vmul.f32 %v294_v40, %v714_v49  ;;  %v296_v45 = vadd.f32 1.0, %v527_v20  ;;  %554 = verf.f32 %v182_v36  ;;  %v185_v49 = vmul.f32 0.70710677, %v783_v11 }
  0x31   :  { %v531_v24 = vpop.eup %530  ;;  %421 = vst [vmem:[#allocation5 + $0x70] sm:$0xff] %v357_v30  ;;  %v359_v46 = vmul.f32 %v295_v41, %v716_v51  ;;  %v297_v43 = vadd.f32 1.0, %v529_v35  ;;  %556 = verf.f32 %v183_v27  ;;  %v113_v51 = vmul.f32 0.5, %v741_v31 }
  0x32   :  { %v533_v44 = vpop.eup %532  ;;  %422 = vst [vmem:[#allocation5 + $0x78] sm:$0xff] %v358_v21  ;;  %v360_v48 = vmul.f32 %v296_v45, %v718_v54  ;;  %v298_v25 = vadd.f32 1.0, %v531_v24  ;;  %558 = verf.f32 %v184_v38  ;;  %v187_v31 = vmul.f32 0.70710677, %v793_v50  ;;  %v828_v24 = vld [vmem:[#allocation2 + $0x158] sm:$0xff] }
  0x33   :  { %v535_v52 = vpop.eup %534  ;;  %423 = vst [vmem:[#allocation5 + $0x80] sm:$0xff] %v359_v46  ;;  %v361_v55 = vmul.f32 %v297_v43, %v720_v58  ;;  %v299_v28 = vadd.f32 1.0, %v533_v44  ;;  %560 = verf.f32 %v185_v49  ;;  %v116_v33 = vmul.f32 0.5, %v753_v53 }
  0x34   :  { %v537_v57 = vpop.eup %536  ;;  %424 = vst [vmem:[#allocation5 + $0x88] sm:$0xff] %v360_v48  ;;  %v362_v54 = vmul.f32 %v298_v25, %v722_v60  ;;  %v300_v61 = vadd.f32 1.0, %v535_v52  ;;  %562 = verf.f32 %v186_v23  ;;  %v115_v60 = vmul.f32 0.5, %v749_v47  ;;  %v832_v52 = vld [vmem:[#allocation2 + $0x160] sm:$0xff]  ;;  %v835_v23 = vld [vmem:[#allocation2 + $0x168] sm:$0xff] }
  0x35   :  { %v539_v62 = vpop.eup %538  ;;  %425 = vst [vmem:[#allocation5 + $0x90] sm:$0xff] %v361_v55  ;;  %v363_v63 = vmul.f32 %v299_v28, %v724_v1  ;;  %v301_v58 = vadd.f32 1.0, %v537_v57  ;;  %564 = verf.f32 %v187_v31  ;;  %v189_v47 = vmul.f32 0.70710677, %v804_v2  ;;  %v842_v31 = vld [vmem:[#allocation2 + $0x178] sm:$0xff] }
  0x36   :  { %v541_v32 = vpop.eup %540  ;;  %426 = vst [vmem:[#allocation5 + $0x98] sm:$0xff] %v362_v54  ;;  %v364_v3 = vmul.f32 %v300_v61, %v726_v5  ;;  %v302_v4 = vadd.f32 1.0, %v539_v62  ;;  %566 = verf.f32 %v188_v39  ;;  %v190_v53 = vmul.f32 0.70710677, %v809_v6  ;;  %v838_v61 = vld [vmem:[#allocation2 + $0x170] sm:$0xff] }
  0x37   :  { %v543_v7 = vpop.eup %542  ;;  %427 = vst [vmem:[#allocation5 + $0xa0] sm:$0xff] %v363_v63  ;;  %v365_v1 = vmul.f32 %v301_v58, %v732_v15  ;;  %v303_v8 = vadd.f32 1.0, %v541_v32  ;;  %v117_v15 = vmul.f32 0.5, %v757_v59  ;;  %v118_v40 = vmul.f32 0.5, %v761_v0 }
  0x38   :  { %v545_v10 = vpop.eup %544  ;;  %428 = vst [vmem:[#allocation5 + $0xa8] sm:$0xff] %v364_v3  ;;  %v366_v12 = vmul.f32 %v302_v4, %v773_v37  ;;  %v304_v5 = vadd.f32 1.0, %v543_v7  ;;  %568 = verf.f32 %v189_v47  ;;  %v191_v41 = vmul.f32 0.70710677, %v815_v13 }
  0x39   :  { %v547_v36 = vpop.eup %546  ;;  %429 = vst [vmem:[#allocation5 + $0xb0] sm:$0xff] %v365_v1  ;;  %v367_v14 = vmul.f32 %v303_v8, %v781_v34  ;;  %v305_v18 = vadd.f32 1.0, %v545_v10  ;;  %570 = verf.f32 %v190_v53  ;;  %v824_v34 = vld [vmem:[#allocation2 + $0x150] sm:$0xff]  ;;  %v119_v45 = vmul.f32 0.5, %v767_v9  ;;  %v849_v1 = vld [vmem:[#allocation2 + $0x188] sm:$0xff] }
  0x3a   :  { %v549_v17 = vpop.eup %548  ;;  %430 = vst [vmem:[#allocation5 + $0xb8] sm:$0xff] %v366_v12  ;;  %v368_v37 = vmul.f32 %v304_v5, %v112_v16  ;;  %v306_v26 = vadd.f32 1.0, %v547_v36  ;;  %v192_v38 = vmul.f32 0.70710677, %v820_v19  ;;  %v120_v16 = vmul.f32 0.5, %v775_v22  ;;  %v853_v5 = vld [vmem:[#allocation2 + $0x190] sm:$0xff] }
  0x3b   :  { %v551_v27 = vpop.eup %550  ;;  %431 = vst [vmem:[#allocation5 + $0xc0] sm:$0xff] %v367_v14  ;;  %v369_v20 = vmul.f32 %v305_v18, %v113_v51  ;;  %v307_v30 = vadd.f32 1.0, %v549_v17  ;;  %572 = verf.f32 %v191_v41  ;;  %v193_v49 = vmul.f32 0.70710677, %v824_v34  ;;  %v858_v17 = vld [vmem:[#allocation2 + $0x198] sm:$0xff] }
  0x3c   :  { %v553_v59 = vpop.eup %552  ;;  %432 = vst [vmem:[#allocation5 + $0xc8] sm:$0xff] %v368_v37  ;;  %v370_v35 = vmul.f32 %v306_v26, %v114_v29  ;;  %v308_v21 = vadd.f32 1.0, %v551_v27  ;;  %574 = verf.f32 %v192_v38  ;;  %v194_v51 = vmul.f32 0.70710677, %v828_v24  ;;  %v862_v27 = vld [vmem:[#allocation2 + $0x1a0] sm:$0xff] }
  0x3d   :  { %v555_v0 = vpop.eup %554  ;;  %433 = vst [vmem:[#allocation5 + $0xd0] sm:$0xff] %v369_v20  ;;  %v371_v46 = vmul.f32 %v307_v30, %v115_v60  ;;  %v309_v43 = vadd.f32 1.0, %v553_v59  ;;  %v121_v54 = vmul.f32 0.5, %v783_v11  ;;  %576 = verf.f32 %v193_v49  ;;  %v845_v11 = vld [vmem:[#allocation2 + $0x180] sm:$0xff]  ;;  %v864_v20 = vld [vmem:[#allocation2 + $0x1a8] sm:$0xff] }
  0x3e   :  { %v557_v44 = vpop.eup %556  ;;  %434 = vst [vmem:[#allocation5 + $0xd8] sm:$0xff] %v370_v35  ;;  %v372_v48 = vmul.f32 %v308_v21, %v116_v33  ;;  %v310_v25 = vadd.f32 1.0, %v555_v0  ;;  %v122_v63 = vmul.f32 0.5, %v787_v42  ;;  %578 = verf.f32 %v194_v51  ;;  %v876_v49 = vld [vmem:[#allocation2 + $0x1c0] sm:$0xff] }
  0x3f   :  { %v559_v9 = vpop.eup %558  ;;  %435 = vst [vmem:[#allocation5 + $0xe0] sm:$0xff] %v371_v46  ;;  %v373_v55 = vmul.f32 %v309_v43, %v117_v15  ;;  %v311_v28 = vadd.f32 1.0, %v557_v44  ;;  %v195_v58 = vmul.f32 0.70710677, %v832_v52  ;;  %v196_v60 = vmul.f32 0.70710677, %v835_v23 }
  0x40   :  { %436 = vst [vmem:[#allocation5 + $0xe8] sm:$0xff] %v372_v48  ;;  %v374_v22 = vmul.f32 %v310_v25, %v118_v40  ;;  %v312_v57 = vadd.f32 1.0, %v559_v9  ;;  %v561_v29 = vpop.eup %560  ;;  %v123_v7 = vmul.f32 0.5, %v793_v50  ;;  %v197_v42 = vmul.f32 0.70710677, %v838_v61 }
  0x41   :  { %437 = vst [vmem:[#allocation5 + $0xf0] sm:$0xff] %v373_v55  ;;  %v375_v62 = vmul.f32 %v311_v28, %v119_v45  ;;  %v563_v32 = vpop.eup %562  ;;  %v313_v4 = vadd.f32 1.0, %v561_v29  ;;  %580 = verf.f32 %v195_v58  ;;  %v124_v10 = vmul.f32 0.5, %v798_v56  ;;  %v868_v45 = vld [vmem:[#allocation2 + $0x1b0] sm:$0xff]  ;;  %v880_v28 = vld [vmem:[#allocation2 + $0x1c8] sm:$0xff] }
  0x42   :  { %438 = vst [vmem:[#allocation5 + $0xf8] sm:$0xff] %v374_v22  ;;  %v376_v3 = vmul.f32 %v312_v57, %v120_v16  ;;  %v314_v39 = vadd.f32 1.0, %v563_v32  ;;  %v565_v8 = vpop.eup %564  ;;  %582 = verf.f32 %v196_v60  ;;  %v198_v12 = vmul.f32 0.70710677, %v842_v31  ;;  %v873_v16 = vld [vmem:[#allocation2 + $0x1b8] sm:$0xff] }
  0x43   :  { %439 = vst [vmem:[#allocation5 + $0x100] sm:$0xff] %v375_v62  ;;  %v377_v33 = vmul.f32 %v313_v4, %v121_v54  ;;  %v567_v47 = vpop.eup %566  ;;  %v315_v14 = vadd.f32 1.0, %v565_v8  ;;  %584 = verf.f32 %v197_v42  ;;  %v199_v50 = vmul.f32 0.70710677, %v845_v11  ;;  %v884_v54 = vld [vmem:[#allocation2 + $0x1d0] sm:$0xff]  ;;  %v889_v4 = vld [vmem:[#allocation2 + $0x1d8] sm:$0xff] }
  0x44   :  { %440 = vst [vmem:[#allocation5 + $0x108] sm:$0xff] %v376_v3  ;;  %v378_v36 = vmul.f32 %v314_v39, %v122_v63  ;;  %v316_v18 = vadd.f32 1.0, %v567_v47  ;;  %v125_v15 = vmul.f32 0.5, %v804_v2  ;;  %586 = verf.f32 %v198_v12  ;;  %v893_v42 = vld [vmem:[#allocation2 + $0x1e0] sm:$0xff]  ;;  %v896_v12 = vld [vmem:[#allocation2 + $0x1e8] sm:$0xff] }
  0x45   :  { %441 = vst [vmem:[#allocation5 + $0x110] sm:$0xff] %v377_v33  ;;  %v200_v53 = vmul.f32 0.70710677, %v849_v1  ;;  %v569_v56 = vpop.eup %568  ;;  %v379_v37 = vmul.f32 %v315_v14, %v123_v7  ;;  %v126_v26 = vmul.f32 0.5, %v809_v6  ;;  %588 = verf.f32 %v199_v50 }
  0x46   :  { %442 = vst [vmem:[#allocation5 + $0x118] sm:$0xff] %v378_v36  ;;  %v201_v40 = vmul.f32 0.70710677, %v853_v5  ;;  %v571_v30 = vpop.eup %570  ;;  %v380_v41 = vmul.f32 %v316_v18, %v124_v10  ;;  %v317_v2 = vadd.f32 1.0, %v569_v56  ;;  %v127_v35 = vmul.f32 0.5, %v815_v13 }
  0x47   :  { %590 = verf.f32 %v200_v53  ;;  %443 = vst [vmem:[#allocation5 + $0x120] sm:$0xff] %v379_v37  ;;  %v318_v59 = vadd.f32 1.0, %v571_v30  ;;  %v202_v21 = vmul.f32 0.70710677, %v858_v17  ;;  %v128_v0 = vmul.f32 0.5, %v820_v19 }
  0x48   :  { %592 = verf.f32 %v201_v40  ;;  %v573_v6 = vpop.eup %572  ;;  %444 = vst [vmem:[#allocation5 + $0x128] sm:$0xff] %v380_v41  ;;  %v381_v38 = vmul.f32 %v317_v2, %v125_v15  ;;  %v203_v46 = vmul.f32 0.70710677, %v862_v27  ;;  %v204_v43 = vmul.f32 0.70710677, %v864_v20 }
  0x49   :  { %v575_v44 = vpop.eup %574  ;;  %v382_v48 = vmul.f32 %v318_v59, %v126_v26  ;;  %v319_v25 = vadd.f32 1.0, %v573_v6  ;;  %v129_v13 = vmul.f32 0.5, %v824_v34  ;;  %594 = verf.f32 %v202_v21 }
  0x4a   :  { %445 = vst [vmem:[#allocation5 + $0x130] sm:$0xff] %v381_v38  ;;  %v320_v9 = vadd.f32 1.0, %v575_v44  ;;  %v130_v55 = vmul.f32 0.5, %v828_v24  ;;  %596 = verf.f32 %v203_v46  ;;  %v205_v19 = vmul.f32 0.70710677, %v868_v45  ;;  %v577_v51 = vpop.eup %576 }
  0x4b   :  { %446 = vst [vmem:[#allocation5 + $0x138] sm:$0xff] %v382_v48  ;;  %v383_v22 = vmul.f32 %v319_v25, %v127_v35  ;;  %v131_v57 = vmul.f32 0.5, %v832_v52  ;;  %598 = verf.f32 %v204_v43  ;;  %v206_v34 = vmul.f32 0.70710677, %v873_v16  ;;  %v579_v29 = vpop.eup %578 }
  0x4c   :  { %v384_v62 = vmul.f32 %v320_v9, %v128_v0  ;;  %v321_v63 = vadd.f32 1.0, %v577_v51  ;;  %600 = verf.f32 %v205_v19  ;;  %v207_v24 = vmul.f32 0.70710677, %v876_v49 }
  0x4d   :  { %447 = vst [vmem:[#allocation5 + $0x140] sm:$0xff] %v383_v22  ;;  %v322_v58 = vadd.f32 1.0, %v579_v29  ;;  %v132_v32 = vmul.f32 0.5, %v835_v23  ;;  %602 = verf.f32 %v206_v34  ;;  %v208_v3 = vmul.f32 0.70710677, %v880_v28 }
  0x4e   :  { %v581_v52 = vpop.eup %580  ;;  %448 = vst [vmem:[#allocation5 + $0x148] sm:$0xff] %v384_v62  ;;  %v385_v60 = vmul.f32 %v321_v63, %v129_v13  ;;  %v133_v39 = vmul.f32 0.5, %v838_v61  ;;  %604 = verf.f32 %v207_v24  ;;  %v209_v7 = vmul.f32 0.70710677, %v884_v54 }
  0x4f   :  { %v583_v8 = vpop.eup %582  ;;  %v386_v33 = vmul.f32 %v322_v58, %v130_v55  ;;  %v323_v10 = vadd.f32 1.0, %v581_v52  ;;  %v134_v23 = vmul.f32 0.5, %v842_v31  ;;  %606 = verf.f32 %v208_v3  ;;  %v902_v31 = vld [vmem:[#allocation2 + $0x1f0] sm:$0xff] }
  0x50   :  { %v585_v47 = vpop.eup %584  ;;  %449 = vst [vmem:[#allocation5 + $0x150] sm:$0xff] %v385_v60  ;;  %v324_v36 = vadd.f32 1.0, %v583_v8  ;;  %v135_v14 = vmul.f32 0.5, %v845_v11  ;;  %608 = verf.f32 %v209_v7  ;;  %v210_v61 = vmul.f32 0.70710677, %v889_v4  ;;  %v905_v11 = vld [vmem:[#allocation2 + $0x1f8] sm:$0xff] }
  0x51   :  { %v587_v50 = vpop.eup %586  ;;  %450 = vst [vmem:[#allocation5 + $0x158] sm:$0xff] %v386_v33  ;;  %v387_v18 = vmul.f32 %v323_v10, %v131_v57  ;;  %v325_v15 = vadd.f32 1.0, %v585_v47  ;;  %v136_v53 = vmul.f32 0.5, %v849_v1  ;;  %v211_v56 = vmul.f32 0.70710677, %v893_v42 }
  0x52   :  { %v589_v37 = vpop.eup %588  ;;  %v388_v26 = vmul.f32 %v324_v36, %v132_v32  ;;  %v326_v40 = vadd.f32 1.0, %v587_v50  ;;  %610 = verf.f32 %v210_v61  ;;  %v212_v30 = vmul.f32 0.70710677, %v896_v12 }
  0x53   :  { %451 = vst [vmem:[#allocation5 + $0x160] sm:$0xff] %v387_v18  ;;  %v389_v2 = vmul.f32 %v325_v15, %v133_v39  ;;  %v327_v59 = vadd.f32 1.0, %v589_v37  ;;  %v137_v35 = vmul.f32 0.5, %v853_v5  ;;  %612 = verf.f32 %v211_v56 }
  0x54   :  { %v591_v41 = vpop.eup %590  ;;  %452 = vst [vmem:[#allocation5 + $0x168] sm:$0xff] %v388_v26  ;;  %v390_v21 = vmul.f32 %v326_v40, %v134_v23  ;;  %614 = verf.f32 %v212_v30  ;;  %v213_v38 = vmul.f32 0.70710677, %v902_v31  ;;  %v138_v43 = vmul.f32 0.5, %v858_v17 }
  0x55   :  { %v593_v1 = vpop.eup %592  ;;  %v328_v6 = vadd.f32 1.0, %v591_v41  ;;  %453 = vst [vmem:[#allocation5 + $0x170] sm:$0xff] %v389_v2  ;;  %v391_v0 = vmul.f32 %v327_v59, %v135_v14  ;;  %v214_v44 = vmul.f32 0.70710677, %v905_v11  ;;  %v139_v5 = vmul.f32 0.5, %v862_v27 }
  0x56   :  { %v329_v46 = vadd.f32 1.0, %v593_v1  ;;  %v595_v48 = vpop.eup %594  ;;  %454 = vst [vmem:[#allocation5 + $0x178] sm:$0xff] %v390_v21  ;;  %616 = verf.f32 %v213_v38  ;;  %v140_v19 = vmul.f32 0.5, %v864_v20  ;;  %v141_v17 = vmul.f32 0.5, %v868_v45 }
  0x57   :  { %v392_v25 = vmul.f32 %v328_v6, %v136_v53  ;;  %v597_v13 = vpop.eup %596  ;;  %455 = vst [vmem:[#allocation5 + $0x180] sm:$0xff] %v391_v0  ;;  %v330_v55 = vadd.f32 1.0, %v595_v48  ;;  %618 = verf.f32 %v214_v44  ;;  %v142_v62 = vmul.f32 0.5, %v873_v16 }
  0x58   :  { %v393_v9 = vmul.f32 %v329_v46, %v137_v35  ;;  %v599_v51 = vpop.eup %598  ;;  %v331_v22 = vadd.f32 1.0, %v597_v13  ;;  %v143_v58 = vmul.f32 0.5, %v876_v49  ;;  %v144_v52 = vmul.f32 0.5, %v880_v28 }
  0x59   :  { %456 = vst [vmem:[#allocation5 + $0x188] sm:$0xff] %v392_v25  ;;  %v601_v57 = vpop.eup %600  ;;  %v394_v34 = vmul.f32 %v330_v55, %v138_v43  ;;  %v332_v29 = vadd.f32 1.0, %v599_v51  ;;  %v145_v7 = vmul.f32 0.5, %v884_v54  ;;  %v146_v49 = vmul.f32 0.5, %v889_v4 }
  0x5a   :  { %457 = vst [vmem:[#allocation5 + $0x190] sm:$0xff] %v393_v9  ;;  %v603_v27 = vpop.eup %602  ;;  %v395_v63 = vmul.f32 %v331_v22, %v139_v5  ;;  %v333_v24 = vadd.f32 1.0, %v601_v57  ;;  %v147_v28 = vmul.f32 0.5, %v893_v42  ;;  %v148_v54 = vmul.f32 0.5, %v896_v12 }
  0x5b   :  { %v605_v32 = vpop.eup %604  ;;  %458 = vst [vmem:[#allocation5 + $0x198] sm:$0xff] %v394_v34  ;;  %v396_v20 = vmul.f32 %v332_v29, %v140_v19  ;;  %v334_v3 = vadd.f32 1.0, %v603_v27  ;;  %v149_v37 = vmul.f32 0.5, %v902_v31  ;;  %v150_v40 = vmul.f32 0.5, %v905_v11 }
  0x5c   :  { %v607_v60 = vpop.eup %606  ;;  %459 = vst [vmem:[#allocation5 + $0x1a0] sm:$0xff] %v395_v63  ;;  %v397_v45 = vmul.f32 %v333_v24, %v141_v17  ;;  %v335_v39 = vadd.f32 1.0, %v605_v32 }
  0x5d   :  { %v609_v8 = vpop.eup %608  ;;  %460 = vst [vmem:[#allocation5 + $0x1a8] sm:$0xff] %v396_v20  ;;  %v398_v16 = vmul.f32 %v334_v3, %v142_v62  ;;  %v336_v33 = vadd.f32 1.0, %v607_v60 }
  0x5e   :  { %461 = vst [vmem:[#allocation5 + $0x1b0] sm:$0xff] %v397_v45  ;;  %v399_v10 = vmul.f32 %v335_v39, %v143_v58  ;;  %v337_v23 = vadd.f32 1.0, %v609_v8 }
  0x5f   :  { %v611_v47 = vpop.eup %610  ;;  %462 = vst [vmem:[#allocation5 + $0x1b8] sm:$0xff] %v398_v16  ;;  %v400_v36 = vmul.f32 %v336_v33, %v144_v52 }
  0x60   :  { %v613_v14 = vpop.eup %612  ;;  %463 = vst [vmem:[#allocation5 + $0x1c0] sm:$0xff] %v399_v10  ;;  %v401_v61 = vmul.f32 %v337_v23, %v145_v7  ;;  %v338_v50 = vadd.f32 1.0, %v611_v47 }
  0x61   :  { %v615_v18 = vpop.eup %614  ;;  %464 = vst [vmem:[#allocation5 + $0x1c8] sm:$0xff] %v400_v36  ;;  %v339_v15 = vadd.f32 1.0, %v613_v14 }
  0x62   :  { %465 = vst [vmem:[#allocation5 + $0x1d0] sm:$0xff] %v401_v61  ;;  %v402_v53 = vmul.f32 %v338_v50, %v146_v49  ;;  %v340_v56 = vadd.f32 1.0, %v615_v18 }
  0x63   :  { %v617_v4 = vpop.eup %616  ;;  %v403_v26 = vmul.f32 %v339_v15, %v147_v28 }
  0x64   :  { %v619_v30 = vpop.eup %618  ;;  %466 = vst [vmem:[#allocation5 + $0x1d8] sm:$0xff] %v402_v53  ;;  %v404_v42 = vmul.f32 %v340_v56, %v148_v54  ;;  %v341_v41 = vadd.f32 1.0, %v617_v4 }
  0x65   :  { %467 = vst [vmem:[#allocation5 + $0x1e0] sm:$0xff] %v403_v26  ;;  %v342_v12 = vadd.f32 1.0, %v619_v30 }
  0x66   :  { %468 = vst [vmem:[#allocation5 + $0x1e8] sm:$0xff] %v404_v42  ;;  %v405_v2 = vmul.f32 %v341_v41, %v149_v37 }
  0x67   :  { %v406_v59 = vmul.f32 %v342_v12, %v150_v40 }
  0x68   :  { %469 = vst [vmem:[#allocation5 + $0x1f0] sm:$0xff] %v405_v2 }
  0x69   :  { %470 = vst [vmem:[#allocation5 + $0x1f8] sm:$0xff] %v406_v59 }
  0x6a   :  { %651 = shalt.err (!%p648_p9)
}
  0x6b   :  { %482 = dma.vmem_to_hbm [thread:$0]  %s477_s13, 8192, %s930_s1, [#allocation4], %s665_s9, %s665_s9, %s666_s10  }
  0x6c   :  { %662 = dma.done.wait [#allocation4], 8192  }
  0x6d   :  { %663 = vsyncadd [#allocation4], 4294959104 }
  0x6e   :  { %486 = vsyncpa [#allocation3], 1 }
  0x6f   :  { %487 = vsyncpa [#allocation4], 1 }

</bundles_post_ra>
